<compile_context>
chip_gen: v7x
topology: tpu7x:2x2x1
jax: 0.10.0
libtpu: 0.0.40
codegen_flags: <defaults>
</compile_context>

<pallas_src>
import functools

import jax
import jax.numpy as jnp
from jax.experimental import pallas as pl
from jax.experimental.pallas import tpu as pltpu


def _spectral_mul_kernel(x_ref, w_ref, o_ref, *, lane_tile):
    """out[b,o,m] = sum_i x[b,i,m] * w[i,o,m]   (complex, real/imag split).

    Block shapes:
      x_ref: (2, bt, Cin, Mp)  real/imag of truncated FFT coefficients
      w_ref: (2, Cin, ct, Mp)  real/imag of the weights
      o_ref: (2, bt, ct, Mp)   packed real/imag output (lane-dense)

    Full-Cin reduction in-register; one store per lane sub-tile.
    """
    _, bt, cin, mp = x_ref.shape
    ct = w_ref.shape[2]

    for c in range(mp // lane_tile):            # static lane sub-tiling
        sl = pl.ds(c * lane_tile, lane_tile)

        def step(i, carry):
            acc_r, acc_i = carry
            xr = x_ref[0, :, pl.ds(i, 1), sl]   # (bt, 1, lt)
            xi = x_ref[1, :, pl.ds(i, 1), sl]
            wr = w_ref[0, pl.ds(i, 1), :, sl]   # (1, ct, lt)
            wi = w_ref[1, pl.ds(i, 1), :, sl]
            return (acc_r + (xr * wr - xi * wi),
                    acc_i + (xr * wi + xi * wr))

        zeros = jnp.zeros((bt, ct, lane_tile), jnp.float32)
        if cin <= 16:
            # Small Cin: fully unrolled, keeps everything in vregs.
            acc_r, acc_i = zeros, zeros
            for i in range(cin):
                acc_r, acc_i = step(i, (acc_r, acc_i))
        else:
            # Large Cin: visible loop so live ranges stay bounded (no spills).
            acc_r, acc_i = jax.lax.fori_loop(0, cin, step, (zeros, zeros))

        o_ref[0, :, :, sl] = acc_r              # single lane-dense store
        o_ref[1, :, :, sl] = acc_i


def _largest_divisor_leq(n, cap):
    cap = max(1, min(n, cap))
    for d in range(cap, 0, -1):
        if n % d == 0:
            return d
    return 1


def _pick_channel_tile(n, cap):
    """Second-minor (sublane) block dim: the full dim, or a multiple of 8 dividing it."""
    if n <= cap:
        return n
    for d in range(cap - cap % 8, 7, -8):
        if n % d == 0:
            return d
    return n  # full dim is always legal


def _pick_lane_tile(mp, cap):
    """In-kernel lane sub-tile: multiple of 128 dividing mp, bounded by cap (<=512)."""
    cap = max(128, min(cap, 512))
    if mp <= cap:
        return mp
    best = 128
    for t in range(256, cap + 1, 128):
        if mp % t == 0:
            best = t
    return best


def _compl_mul2d_pallas(x_ri, w_ri):
    """x_ri: (2, B, Cin, Mp) f32, w_ri: (2, Cin, Cout, Mp) f32.

    Returns packed real/imag output (2, B, Cout, Mp) f32.
    """
    _, B, Cin, Mp = x_ri.shape
    Cout = w_ri.shape[2]
    f32 = 4

    vmem_budget = 36 * 1024 * 1024   # headroom under the 48 MiB limit (v7x-safe)

    # Batch tile: full batch unless the double-buffered x block would exceed ~8 MiB.
    bt = _largest_divisor_leq(B, max(1, (8 * 1024 * 1024) // (2 * Cin * Mp * f32)))

    # Cout tile from the remaining VMEM budget (double-buffered w + out blocks).
    x_blk = 2 * bt * Cin * Mp * f32
    per_ct = 2 * (2 * Cin * Mp * f32) + 2 * (2 * bt * Mp * f32)
    ct = _pick_channel_tile(Cout, max(8, (vmem_budget - 2 * x_blk) // per_ct))

    # Lane sub-tile so the in-register accumulator (2*bt*ct*lt f32) stays ~<=16 vregs.
    lt = _pick_lane_tile(Mp, max(128, 16384 // (2 * bt * ct)))

    grid = (Cout // ct, B // bt)
    kernel = functools.partial(_spectral_mul_kernel, lane_tile=lt)

    return pl.pallas_call(
        kernel,
        out_shape=jax.ShapeDtypeStruct((2, B, Cout, Mp), jnp.float32),
        grid_spec=pltpu.PrefetchScalarGridSpec(
            num_scalar_prefetch=0,
            grid=grid,
            in_specs=[
                # x: depends only on the batch tile.
                pl.BlockSpec((2, bt, Cin, Mp), lambda co, b: (0, b, 0, 0)),
                # w: independent of the inner batch axis -> stays VMEM-resident
                # across the batch sweep (full Cin in one block).
                pl.BlockSpec((2, Cin, ct, Mp), lambda co, b: (0, 0, co, 0)),
            ],
            out_specs=pl.BlockSpec((2, bt, ct, Mp), lambda co, b: (0, b, co, 0)),
        ),
        compiler_params=pltpu.CompilerParams(
            dimension_semantics=("parallel", "parallel"),
            vmem_limit_bytes=48 * 1024 * 1024,
        ),
    )(x_ri, w_ri)


def spectral_conv2d(x, weights1, weights2, modes1, modes2):
    """Forward pass of SpectralConv2d (NCHW, matching the PyTorch module).

    x: (B, Cin, H, W) float32
    weights1/weights2: (Cin, Cout, modes1, modes2) complex64
    returns: (B, Cout, H, W) float32
    """
    B, Cin, H, W = x.shape
    Cout = weights1.shape[1]
    Wf = W // 2 + 1
    assert modes2 <= Wf, "modes2 must be <= W//2 + 1"
    assert modes1 <= H, "modes1 must be <= H"

    # TODO(synk): rfft2/irfft2 have no Pallas equivalent; they stay as XLA FFT ops.
    x_ft = jnp.fft.rfft2(x)                                   # (B, Cin, H, Wf) c64

    M = modes1 * modes2
    M2 = 2 * M                                                # top + bottom slabs folded
    Mp = ((M2 + 127) // 128) * 128                            # lane-dense pad

    top = x_ft[:, :, :modes1, :modes2].reshape(B, Cin, M)
    bot = x_ft[:, :, H - modes1:, :modes2].reshape(B, Cin, M)
    x_modes = jnp.concatenate([top, bot], axis=-1)            # (B, Cin, 2M) c64
    x_ri = jnp.stack([jnp.real(x_modes), jnp.imag(x_modes)], axis=0)   # (2,B,Cin,2M)

    w_modes = jnp.concatenate([weights1.reshape(Cin, Cout, M),
                               weights2.reshape(Cin, Cout, M)], axis=-1)  # (Cin,Cout,2M)
    w_ri = jnp.stack([jnp.real(w_modes), jnp.imag(w_modes)], axis=0)      # (2,Cin,Cout,2M)

    if Mp != M2:
        pad = [(0, 0)] * 3 + [(0, Mp - M2)]
        x_ri = jnp.pad(x_ri, pad)
        w_ri = jnp.pad(w_ri, pad)

    out_ri = _compl_mul2d_pallas(x_ri, w_ri)                  # (2, B, Cout, Mp)

    out_c = jax.lax.complex(out_ri[0, :, :, :M2], out_ri[1, :, :, :M2])   # (B,Cout,2M)
    top_c = out_c[:, :, :M].reshape(B, Cout, modes1, modes2)
    bot_c = out_c[:, :, M:].reshape(B, Cout, modes1, modes2)

    out_ft = jnp.zeros((B, Cout, H, Wf), dtype=jnp.complex64)
    out_ft = out_ft.at[:, :, :modes1, :modes2].set(top_c)
    out_ft = out_ft.at[:, :, H - modes1:, :modes2].set(bot_c)
    return jnp.fft.irfft2(out_ft, s=(H, W))


def _reference(x, weights1, weights2, modes1, modes2):
    """Pure-JAX reference matching the PyTorch module semantics."""
    B, Cin, H, W = x.shape
    Cout = weights1.shape[1]
    Wf = W // 2 + 1
    x_ft = jnp.fft.rfft2(x)
    out_ft = jnp.zeros((B, Cout, H, Wf), dtype=jnp.complex64)
    out_ft = out_ft.at[:, :, :modes1, :modes2].set(
        jnp.einsum('bixy,ioxy->boxy', x_ft[:, :, :modes1, :modes2], weights1))
    out_ft = out_ft.at[:, :, H - modes1:, :modes2].set(
        jnp.einsum('bixy,ioxy->boxy', x_ft[:, :, H - modes1:, :modes2], weights2))
    return jnp.fft.irfft2(out_ft, s=(H, W))


if __name__ == "__main__":
    # Small, deterministic config consistent with the module.
    B, Cin, Cout = 2, 4, 4
    H, W = 16, 16
    modes1, modes2 = 4, 5  # modes2 <= W//2 + 1

    key = jax.random.PRNGKey(0)
    kx, k1r, k1i, k2r, k2i = jax.random.split(key, 5)

    x = jax.random.normal(kx, (B, Cin, H, W), dtype=jnp.float32)

    scale = 1.0 / (Cin * Cout)
    # torch.rand(..., dtype=cfloat) -> uniform [0,1) real and imag parts.
    w1 = jax.lax.complex(
        scale * jax.random.uniform(k1r, (Cin, Cout, modes1, modes2), dtype=jnp.float32),
        scale * jax.random.uniform(k1i, (Cin, Cout, modes1, modes2), dtype=jnp.float32),
    ).astype(jnp.complex64)
    w2 = jax.lax.complex(
        scale * jax.random.uniform(k2r, (Cin, Cout, modes1, modes2), dtype=jnp.float32),
        scale * jax.random.uniform(k2i, (Cin, Cout, modes1, modes2), dtype=jnp.float32),
    ).astype(jnp.complex64)

    fwd = jax.jit(functools.partial(spectral_conv2d, modes1=modes1, modes2=modes2))
    out = fwd(x, w1, w2)
    out = jax.block_until_ready(out)

    ref = _reference(x, w1, w2, modes1, modes2)
    assert out.shape == (B, Cout, H, W)
    assert jnp.allclose(out, ref, atol=1e-4, rtol=1e-4), "mismatch vs reference"

    print("KERNEL_OK")
</pallas_src>

<mosaic_0001>
module attributes {stable_mosaic.version = 11 : i64} {
  func.func @_spectral_mul_kernel(%arg0: i32, %arg1: i32, %arg2: memref<2x2x4x128xf32, #tpu.memory_space<vmem>>, %arg3: memref<2x4x4x128xf32, #tpu.memory_space<vmem>>, %arg4: memref<2x2x4x128xf32, #tpu.memory_space<vmem>>) attributes {dimension_semantics = [#tpu.dimension_semantics<parallel>, #tpu.dimension_semantics<parallel>], iteration_bounds = array<i64: 1, 1>, scalar_prefetch = 0 : i64, scratch_operands = 0 : i64, tpu.core_type = #tpu.core_type<tc>, window_params = [{transform_indices = @transform_0, window_bounds = array<i64: 2, 2, 4, 128>}, {transform_indices = @transform_1, window_bounds = array<i64: 2, 4, 4, 128>}, {transform_indices = @transform_2, window_bounds = array<i64: 2, 2, 4, 128>}]} {
    %cst = arith.constant 0.000000e+00 : f32
    %0 = vector.broadcast %cst : f32 to vector<2x4x128xf32>
    %c0 = arith.constant 0 : index
    %c0_0 = arith.constant 0 : index
    %c0_1 = arith.constant 0 : index
    %c0_2 = arith.constant 0 : index
    %1 = vector.load %arg2[%c0, %c0_0, %c0_1, %c0_2] : memref<2x2x4x128xf32, #tpu.memory_space<vmem>>, vector<1x2x1x128xf32>
    %2 = vector.shape_cast %1 : vector<1x2x1x128xf32> to vector<2x1x128xf32>
    %c1 = arith.constant 1 : index
    %c0_3 = arith.constant 0 : index
    %c0_4 = arith.constant 0 : index
    %c0_5 = arith.constant 0 : index
    %3 = vector.load %arg2[%c1, %c0_3, %c0_4, %c0_5] : memref<2x2x4x128xf32, #tpu.memory_space<vmem>>, vector<1x2x1x128xf32>
    %4 = vector.shape_cast %3 : vector<1x2x1x128xf32> to vector<2x1x128xf32>
    %c0_6 = arith.constant 0 : index
    %c0_7 = arith.constant 0 : index
    %c0_8 = arith.constant 0 : index
    %c0_9 = arith.constant 0 : index
    %5 = vector.load %arg3[%c0_6, %c0_7, %c0_8, %c0_9] : memref<2x4x4x128xf32, #tpu.memory_space<vmem>>, vector<1x1x4x128xf32>
    %6 = vector.shape_cast %5 : vector<1x1x4x128xf32> to vector<1x4x128xf32>
    %c1_10 = arith.constant 1 : index
    %c0_11 = arith.constant 0 : index
    %c0_12 = arith.constant 0 : index
    %c0_13 = arith.constant 0 : index
    %7 = vector.load %arg3[%c1_10, %c0_11, %c0_12, %c0_13] : memref<2x4x4x128xf32, #tpu.memory_space<vmem>>, vector<1x1x4x128xf32>
    %8 = vector.shape_cast %7 : vector<1x1x4x128xf32> to vector<1x4x128xf32>
    %9 = vector.broadcast %2 : vector<2x1x128xf32> to vector<2x4x128xf32>
    %10 = vector.broadcast %6 : vector<1x4x128xf32> to vector<2x4x128xf32>
    %11 = arith.mulf %9, %10 : vector<2x4x128xf32>
    %12 = vector.broadcast %4 : vector<2x1x128xf32> to vector<2x4x128xf32>
    %13 = vector.broadcast %8 : vector<1x4x128xf32> to vector<2x4x128xf32>
    %14 = arith.mulf %12, %13 : vector<2x4x128xf32>
    %15 = arith.subf %11, %14 : vector<2x4x128xf32>
    %16 = arith.addf %0, %15 : vector<2x4x128xf32>
    %17 = vector.broadcast %2 : vector<2x1x128xf32> to vector<2x4x128xf32>
    %18 = vector.broadcast %8 : vector<1x4x128xf32> to vector<2x4x128xf32>
    %19 = arith.mulf %17, %18 : vector<2x4x128xf32>
    %20 = vector.broadcast %4 : vector<2x1x128xf32> to vector<2x4x128xf32>
    %21 = vector.broadcast %6 : vector<1x4x128xf32> to vector<2x4x128xf32>
    %22 = arith.mulf %20, %21 : vector<2x4x128xf32>
    %23 = arith.addf %19, %22 : vector<2x4x128xf32>
    %24 = arith.addf %0, %23 : vector<2x4x128xf32>
    %c0_14 = arith.constant 0 : index
    %c0_15 = arith.constant 0 : index
    %c1_16 = arith.constant 1 : index
    %c0_17 = arith.constant 0 : index
    %25 = vector.load %arg2[%c0_14, %c0_15, %c1_16, %c0_17] : memref<2x2x4x128xf32, #tpu.memory_space<vmem>>, vector<1x2x1x128xf32>
    %26 = vector.shape_cast %25 : vector<1x2x1x128xf32> to vector<2x1x128xf32>
    %c1_18 = arith.constant 1 : index
    %c0_19 = arith.constant 0 : index
    %c1_20 = arith.constant 1 : index
    %c0_21 = arith.constant 0 : index
    %27 = vector.load %arg2[%c1_18, %c0_19, %c1_20, %c0_21] : memref<2x2x4x128xf32, #tpu.memory_space<vmem>>, vector<1x2x1x128xf32>
    %28 = vector.shape_cast %27 : vector<1x2x1x128xf32> to vector<2x1x128xf32>
    %c0_22 = arith.constant 0 : index
    %c1_23 = arith.constant 1 : index
    %c0_24 = arith.constant 0 : index
    %c0_25 = arith.constant 0 : index
    %29 = vector.load %arg3[%c0_22, %c1_23, %c0_24, %c0_25] : memref<2x4x4x128xf32, #tpu.memory_space<vmem>>, vector<1x1x4x128xf32>
    %30 = vector.shape_cast %29 : vector<1x1x4x128xf32> to vector<1x4x128xf32>
    %c1_26 = arith.constant 1 : index
    %c1_27 = arith.constant 1 : index
    %c0_28 = arith.constant 0 : index
    %c0_29 = arith.constant 0 : index
    %31 = vector.load %arg3[%c1_26, %c1_27, %c0_28, %c0_29] : memref<2x4x4x128xf32, #tpu.memory_space<vmem>>, vector<1x1x4x128xf32>
    %32 = vector.shape_cast %31 : vector<1x1x4x128xf32> to vector<1x4x128xf32>
    %33 = vector.broadcast %26 : vector<2x1x128xf32> to vector<2x4x128xf32>
    %34 = vector.broadcast %30 : vector<1x4x128xf32> to vector<2x4x128xf32>
    %35 = arith.mulf %33, %34 : vector<2x4x128xf32>
    %36 = vector.broadcast %28 : vector<2x1x128xf32> to vector<2x4x128xf32>
    %37 = vector.broadcast %32 : vector<1x4x128xf32> to vector<2x4x128xf32>
    %38 = arith.mulf %36, %37 : vector<2x4x128xf32>
    %39 = arith.subf %35, %38 : vector<2x4x128xf32>
    %40 = arith.addf %16, %39 : vector<2x4x128xf32>
    %41 = vector.broadcast %26 : vector<2x1x128xf32> to vector<2x4x128xf32>
    %42 = vector.broadcast %32 : vector<1x4x128xf32> to vector<2x4x128xf32>
    %43 = arith.mulf %41, %42 : vector<2x4x128xf32>
    %44 = vector.broadcast %28 : vector<2x1x128xf32> to vector<2x4x128xf32>
    %45 = vector.broadcast %30 : vector<1x4x128xf32> to vector<2x4x128xf32>
    %46 = arith.mulf %44, %45 : vector<2x4x128xf32>
    %47 = arith.addf %43, %46 : vector<2x4x128xf32>
    %48 = arith.addf %24, %47 : vector<2x4x128xf32>
    %c0_30 = arith.constant 0 : index
    %c0_31 = arith.constant 0 : index
    %c2 = arith.constant 2 : index
    %c0_32 = arith.constant 0 : index
    %49 = vector.load %arg2[%c0_30, %c0_31, %c2, %c0_32] : memref<2x2x4x128xf32, #tpu.memory_space<vmem>>, vector<1x2x1x128xf32>
    %50 = vector.shape_cast %49 : vector<1x2x1x128xf32> to vector<2x1x128xf32>
    %c1_33 = arith.constant 1 : index
    %c0_34 = arith.constant 0 : index
    %c2_35 = arith.constant 2 : index
    %c0_36 = arith.constant 0 : index
    %51 = vector.load %arg2[%c1_33, %c0_34, %c2_35, %c0_36] : memref<2x2x4x128xf32, #tpu.memory_space<vmem>>, vector<1x2x1x128xf32>
    %52 = vector.shape_cast %51 : vector<1x2x1x128xf32> to vector<2x1x128xf32>
    %c0_37 = arith.constant 0 : index
    %c2_38 = arith.constant 2 : index
    %c0_39 = arith.constant 0 : index
    %c0_40 = arith.constant 0 : index
    %53 = vector.load %arg3[%c0_37, %c2_38, %c0_39, %c0_40] : memref<2x4x4x128xf32, #tpu.memory_space<vmem>>, vector<1x1x4x128xf32>
    %54 = vector.shape_cast %53 : vector<1x1x4x128xf32> to vector<1x4x128xf32>
    %c1_41 = arith.constant 1 : index
    %c2_42 = arith.constant 2 : index
    %c0_43 = arith.constant 0 : index
    %c0_44 = arith.constant 0 : index
    %55 = vector.load %arg3[%c1_41, %c2_42, %c0_43, %c0_44] : memref<2x4x4x128xf32, #tpu.memory_space<vmem>>, vector<1x1x4x128xf32>
    %56 = vector.shape_cast %55 : vector<1x1x4x128xf32> to vector<1x4x128xf32>
    %57 = vector.broadcast %50 : vector<2x1x128xf32> to vector<2x4x128xf32>
    %58 = vector.broadcast %54 : vector<1x4x128xf32> to vector<2x4x128xf32>
    %59 = arith.mulf %57, %58 : vector<2x4x128xf32>
    %60 = vector.broadcast %52 : vector<2x1x128xf32> to vector<2x4x128xf32>
    %61 = vector.broadcast %56 : vector<1x4x128xf32> to vector<2x4x128xf32>
    %62 = arith.mulf %60, %61 : vector<2x4x128xf32>
    %63 = arith.subf %59, %62 : vector<2x4x128xf32>
    %64 = arith.addf %40, %63 : vector<2x4x128xf32>
    %65 = vector.broadcast %50 : vector<2x1x128xf32> to vector<2x4x128xf32>
    %66 = vector.broadcast %56 : vector<1x4x128xf32> to vector<2x4x128xf32>
    %67 = arith.mulf %65, %66 : vector<2x4x128xf32>
    %68 = vector.broadcast %52 : vector<2x1x128xf32> to vector<2x4x128xf32>
    %69 = vector.broadcast %54 : vector<1x4x128xf32> to vector<2x4x128xf32>
    %70 = arith.mulf %68, %69 : vector<2x4x128xf32>
    %71 = arith.addf %67, %70 : vector<2x4x128xf32>
    %72 = arith.addf %48, %71 : vector<2x4x128xf32>
    %c0_45 = arith.constant 0 : index
    %c0_46 = arith.constant 0 : index
    %c3 = arith.constant 3 : index
    %c0_47 = arith.constant 0 : index
    %73 = vector.load %arg2[%c0_45, %c0_46, %c3, %c0_47] : memref<2x2x4x128xf32, #tpu.memory_space<vmem>>, vector<1x2x1x128xf32>
    %74 = vector.shape_cast %73 : vector<1x2x1x128xf32> to vector<2x1x128xf32>
    %c1_48 = arith.constant 1 : index
    %c0_49 = arith.constant 0 : index
    %c3_50 = arith.constant 3 : index
    %c0_51 = arith.constant 0 : index
    %75 = vector.load %arg2[%c1_48, %c0_49, %c3_50, %c0_51] : memref<2x2x4x128xf32, #tpu.memory_space<vmem>>, vector<1x2x1x128xf32>
    %76 = vector.shape_cast %75 : vector<1x2x1x128xf32> to vector<2x1x128xf32>
    %c0_52 = arith.constant 0 : index
    %c3_53 = arith.constant 3 : index
    %c0_54 = arith.constant 0 : index
    %c0_55 = arith.constant 0 : index
    %77 = vector.load %arg3[%c0_52, %c3_53, %c0_54, %c0_55] : memref<2x4x4x128xf32, #tpu.memory_space<vmem>>, vector<1x1x4x128xf32>
    %78 = vector.shape_cast %77 : vector<1x1x4x128xf32> to vector<1x4x128xf32>
    %c1_56 = arith.constant 1 : index
    %c3_57 = arith.constant 3 : index
    %c0_58 = arith.constant 0 : index
    %c0_59 = arith.constant 0 : index
    %79 = vector.load %arg3[%c1_56, %c3_57, %c0_58, %c0_59] : memref<2x4x4x128xf32, #tpu.memory_space<vmem>>, vector<1x1x4x128xf32>
    %80 = vector.shape_cast %79 : vector<1x1x4x128xf32> to vector<1x4x128xf32>
    %81 = vector.broadcast %74 : vector<2x1x128xf32> to vector<2x4x128xf32>
    %82 = vector.broadcast %78 : vector<1x4x128xf32> to vector<2x4x128xf32>
    %83 = arith.mulf %81, %82 : vector<2x4x128xf32>
    %84 = vector.broadcast %76 : vector<2x1x128xf32> to vector<2x4x128xf32>
    %85 = vector.broadcast %80 : vector<1x4x128xf32> to vector<2x4x128xf32>
    %86 = arith.mulf %84, %85 : vector<2x4x128xf32>
    %87 = arith.subf %83, %86 : vector<2x4x128xf32>
    %88 = arith.addf %64, %87 : vector<2x4x128xf32>
    %89 = vector.broadcast %74 : vector<2x1x128xf32> to vector<2x4x128xf32>
    %90 = vector.broadcast %80 : vector<1x4x128xf32> to vector<2x4x128xf32>
    %91 = arith.mulf %89, %90 : vector<2x4x128xf32>
    %92 = vector.broadcast %76 : vector<2x1x128xf32> to vector<2x4x128xf32>
    %93 = vector.broadcast %78 : vector<1x4x128xf32> to vector<2x4x128xf32>
    %94 = arith.mulf %92, %93 : vector<2x4x128xf32>
    %95 = arith.addf %91, %94 : vector<2x4x128xf32>
    %96 = arith.addf %72, %95 : vector<2x4x128xf32>
    %c0_60 = arith.constant 0 : index
    %c0_61 = arith.constant 0 : index
    %c0_62 = arith.constant 0 : index
    %c0_63 = arith.constant 0 : index
    %97 = vector.load %arg4[%c0_60, %c0_61, %c0_62, %c0_63] : memref<2x2x4x128xf32, #tpu.memory_space<vmem>>, vector<1x2x4x128xf32>
    %98 = vector.shape_cast %97 : vector<1x2x4x128xf32> to vector<2x4x128xf32>
    %99 = vector.shape_cast %88 : vector<2x4x128xf32> to vector<1x2x4x128xf32>
    tpu.vector_store %arg4[%c0_60, %c0_61, %c0_62, %c0_63], %99 {strides = array<i32>} : memref<2x2x4x128xf32, #tpu.memory_space<vmem>>, vector<1x2x4x128xf32>,
    %c1_64 = arith.constant 1 : index
    %c0_65 = arith.constant 0 : index
    %c0_66 = arith.constant 0 : index
    %c0_67 = arith.constant 0 : index
    %100 = vector.load %arg4[%c1_64, %c0_65, %c0_66, %c0_67] : memref<2x2x4x128xf32, #tpu.memory_space<vmem>>, vector<1x2x4x128xf32>
    %101 = vector.shape_cast %100 : vector<1x2x4x128xf32> to vector<2x4x128xf32>
    %102 = vector.shape_cast %96 : vector<2x4x128xf32> to vector<1x2x4x128xf32>
    tpu.vector_store %arg4[%c1_64, %c0_65, %c0_66, %c0_67], %102 {strides = array<i32>} : memref<2x2x4x128xf32, #tpu.memory_space<vmem>>, vector<1x2x4x128xf32>,
    return
  }
  func.func @transform_0(%arg0: i32, %arg1: i32) -> (i32, i32, i32, i32) {
    %c0_i32 = arith.constant 0 : i32
    %c0_i32_0 = arith.constant 0 : i32
    %c0_i32_1 = arith.constant 0 : i32
    %c0_i32_2 = arith.constant 0 : i32
    return %c0_i32, %arg1, %c0_i32_0, %c0_i32_1 : i32, i32, i32, i32
  }
  func.func @transform_1(%arg0: i32, %arg1: i32) -> (i32, i32, i32, i32) {
    %c0_i32 = arith.constant 0 : i32
    %c0_i32_0 = arith.constant 0 : i32
    %c0_i32_1 = arith.constant 0 : i32
    %c0_i32_2 = arith.constant 0 : i32
    return %c0_i32, %c0_i32_0, %arg0, %c0_i32_1 : i32, i32, i32, i32
  }
  func.func @transform_2(%arg0: i32, %arg1: i32) -> (i32, i32, i32, i32) {
    %c0_i32 = arith.constant 0 : i32
    %c0_i32_0 = arith.constant 0 : i32
    %c0_i32_1 = arith.constant 0 : i32
    return %c0_i32, %arg1, %arg0, %c0_i32_0 : i32, i32, i32, i32
  }
}

</mosaic_0001>

<bundles_post_ra>
// kernel: custom-call
= control target key start
LH: loop header
LB: loop body
LE: loop exit
PB: predicated region body
PF: predicated region fallthrough
CT: control target
= control target key end

     0   :  { %2 = vsyncpa [#allocation0], 0  ;;  %s61_s0 = inlined_call_operand.hbm [shape: c64[4,4,4,5], index: 0, kind: input, shape index: {}]   ;;  %s62_s1 = inlined_call_operand.vmem [shape: f32[4,4,4,5], index: 1, kind: output, shape index: {}]  }
   0x1   :  { %s3_s8 = sshll.u32 %s62_s1, 4  ;;  %s9_s11 = scalar_lea.hbm %s61_s0, 1024  ;;  %s4_s8 = int_to_ptr.vmem [resolvable:$true] %s3_s8 }
   0x2   :  { %p10_p0 = scmp.ne.s32.totalorder %s61_s0, %s9_s11  ;;  %s11_s16 = scalar_lea.hbm %s61_s0, 2048 }
   0x3   :  { %p12_p1 = scmp.lt.u32.totalorder %s11_s16, %s9_s11  ;;  %p13_p2 = scmp.lt.u32.totalorder %s9_s11, %s61_s0 }
   0x5   :  { %p14_p3 = por %p13_p2, %p12_p1 }
   0x7   :  { %p15_p4 = pnand %p14_p3, %p10_p0 }
   0x9   :  { %18 = shalt.err (!%p15_p4)  }
   0xa   :  { %s19_s1 = scalar_lea.vmem %s4_s8, 1024  ;;  %p24_p6 = scmp.lt.s32.totalorder %s4_s8, %s4_s8 }
   0xb   :  { %p20_p5 = scmp.ne.s32.totalorder %s4_s8, %s19_s1  ;;  %p25_p7 = scmp.lt.s32.totalorder %s19_s1, %s19_s1 }
   0xd   :  { %p26_p8 = por %p25_p7, %p24_p6 }
   0xf   :  { %p27_p9 = pnand %p26_p8, %p20_p5 }
  0x11   :  { %30 = shalt.err (!%p27_p9)  }
  0x12   :  { %6 = dma.hbm_to_vmem [thread:$0]  %s61_s0, 1024, %s4_s8, [#allocation0] }
  0x13   :  { %31 = dma.done.wait [#allocation0], 1024  }
  0x14   :  { %32 = vsyncadd [#allocation0], 4294966272 }
  0x15   :  { %8 = vsyncpa [#allocation0], 1 }

// kernel: custom-call.1
= control target key start
LH: loop header
LB: loop body
LE: loop exit
PB: predicated region body
PF: predicated region fallthrough
CT: control target
= control target key end

     0   :  { %s59_s0 = inlined_call_operand.hbm [shape: c64[4,4,4,5], index: 0, kind: input, shape index: {}]   ;;  %s60_s1 = inlined_call_operand.vmem [shape: f32[4,4,4,5], index: 1, kind: output, shape index: {}]  }
   0x1   :  { %s2_s8 = scalar_lea.hbm %s59_s0, 1024 }
   0x2   :  { %3 = vsyncpa [#allocation0], 0  ;;  %s4_s11 = sshll.u32 %s60_s1, 4  ;;  %s34_s14 = scalar_lea.hbm %s59_s0, 2048  ;;  %s5_s11 = int_to_ptr.vmem [resolvable:$true] %s4_s11 }
   0x3   :  { %p11_p0 = scmp.ne.s32.totalorder %s2_s8, %s34_s14  ;;  %p13_p1 = scmp.lt.u32.totalorder %s2_s8, %s59_s0 }
   0x4   :  { %p14_p2 = scmp.lt.u32.totalorder %s34_s14, %s34_s14  ;;  %p16_p4 = scmp.lt.u32.totalorder %s34_s14, %s2_s8 }
   0x6   :  { %p15_p3 = por %p14_p2, %p13_p1 }
   0x8   :  { %p17_p5 = por %p16_p4, %p15_p3 }
   0xa   :  { %p18_p6 = pnand %p17_p5, %p11_p0 }
   0xc   :  { %21 = shalt.err (!%p18_p6)  }
   0xd   :  { %s22_s17 = scalar_lea.vmem %s5_s11, 1024  ;;  %p27_p8 = scmp.lt.s32.totalorder %s5_s11, %s5_s11 }
   0xe   :  { %p23_p7 = scmp.ne.s32.totalorder %s5_s11, %s22_s17  ;;  %p28_p9 = scmp.lt.s32.totalorder %s22_s17, %s22_s17 }
  0x10   :  { %p29_p10 = por %p28_p9, %p27_p8 }
  0x12   :  { %p30_p11 = pnand %p29_p10, %p23_p7 }
  0x14   :  { %33 = shalt.err (!%p30_p11)  }
  0x15   :  { %7 = dma.hbm_to_vmem [thread:$0]  %s2_s8, 1024, %s5_s11, [#allocation0] }
  0x16   :  { %35 = dma.done.wait [#allocation0], 1024  }
  0x17   :  { %36 = vsyncadd [#allocation0], 4294966272 }
  0x18   :  { %9 = vsyncpa [#allocation0], 1 }

// kernel: reverse.0
= control target key start
LH: loop header
LB: loop body
LE: loop exit
PB: predicated region body
PF: predicated region fallthrough
CT: control target
= control target key end

     0   :  { %v71_v3 = vlaneseq  ;;  %v64_v9 = vld [vmem:[#allocation0 + $0x7] ss:$-1 sm:$0xff]  ;;  %v78_v12 = vld [vmem:[#allocation0 + $0x17] ss:$-1 sm:$0xff]  ;;  %s329_s0 = inlined_call_operand.vmem [shape: f32[2,4,16,7], index: 0, kind: input, shape index: {}]   ;;  %s330_s1 = inlined_call_operand.vmem [shape: f32[2,4,16,7], index: 1, kind: output, shape index: {}]  }
   0x1   :  { %v44_v0 = vld [vmem:[%s329_s0] sm:$0xff]  ;;  %v46_v1 = vld [vmem:[%s329_s0 + $0x8] sm:$0xff]  ;;  %v48_v2 = vld [vmem:[%s329_s0 + $0x10] sm:$0xff]  ;;  %v65_v10 = vrot.slane %v64_v9, 1  ;;  %v79_v14 = vrot.slane %v78_v12, 1 }
   0x2   :  { %45 = vst [vmem:[#allocation0 + $0x8] sm:$0xff] %v44_v0  ;;  %47 = vst [vmem:[#allocation0 + $0x18] sm:$0xff] %v46_v1  ;;  %v50_v4 = vld [vmem:[%s329_s0 + $0x18] sm:$0xff]  ;;  %v52_v5 = vld [vmem:[%s329_s0 + $0x20] sm:$0xff]  ;;  %v72_v11 = vshrl.u32 %v71_v3, 7 }
   0x3   :  { %49 = vst [vmem:[#allocation0 + $0x28] sm:$0xff] %v48_v2  ;;  %v54_v6 = vld [vmem:[%s329_s0 + $0x28] sm:$0xff]  ;;  %51 = vst [vmem:[#allocation0 + $0x38] sm:$0xff] %v50_v4  ;;  %v56_v7 = vld [vmem:[%s329_s0 + $0x30] sm:$0xff] }
   0x4   :  { %53 = vst [vmem:[#allocation0 + $0x48] sm:$0xff] %v52_v5  ;;  %55 = vst [vmem:[#allocation0 + $0x58] sm:$0xff] %v54_v6  ;;  %v58_v8 = vld [vmem:[%s329_s0 + $0x38] sm:$0xff]  ;;  %v92_v13 = vld [vmem:[#allocation0 + $0x27] ss:$-1 sm:$0xff]  ;;  %vm73_vm0 = vcmp.lt.s32.totalorder %v72_v11, 7 }
   0x5   :  { %57 = vst [vmem:[#allocation0 + $0x68] sm:$0xff] %v56_v7  ;;  %59 = vst [vmem:[#allocation0 + $0x78] sm:$0xff] %v58_v8  ;;  %v93_v15 = vrot.slane %v92_v13, 1  ;;  %v106_v16 = vld [vmem:[#allocation0 + $0x37] ss:$-1 sm:$0xff] }
   0x6   :  { %66 = vst [vmem:[#allocation1] sm:$0xff] %v65_v10  ;;  %v107_v17 = vrot.slane %v106_v16, 1  ;;  %v120_v18 = vld [vmem:[#allocation0 + $0x47] ss:$-1 sm:$0xff]  ;;  %v134_v19 = vld [vmem:[#allocation0 + $0x57] ss:$-1 sm:$0xff] }
   0x7   :  { %80 = vst [vmem:[#allocation1 + $0x8] sm:$0xff] %v79_v14  ;;  %94 = vst [vmem:[#allocation1 + $0x10] sm:$0xff] %v93_v15  ;;  %v121_v20 = vrot.slane %v120_v18, 1  ;;  %v135_v21 = vrot.slane %v134_v19, 1  ;;  %v148_v22 = vld [vmem:[#allocation0 + $0x67] ss:$-1 sm:$0xff] }
   0x8   :  { %v162_v23 = vld [vmem:[#allocation0 + $0x77] ss:$-1 sm:$0xff]  ;;  %108 = vst [vmem:[#allocation1 + $0x18] sm:$0xff] %v107_v17  ;;  %v149_v24 = vrot.slane %v148_v22, 1 }
   0x9   :  { %v163_v25 = vrot.slane %v162_v23, 1  ;;  %v69_v26 = vld [vmem:[#allocation0 + $0xf] ss:$-1 sm:$0xff]  ;;  %v83_v27 = vld [vmem:[#allocation0 + $0x1f] ss:$-1 sm:$0xff]  ;;  %122 = vst [vmem:[#allocation1 + $0x20] sm:$0xff] %v121_v20 }
   0xa   :  { %v97_v28 = vld [vmem:[#allocation0 + $0x2f] ss:$-1 sm:$0xff]  ;;  %136 = vst [vmem:[#allocation1 + $0x28] sm:$0xff] %v135_v21  ;;  %v70_v29 = vrot.slane %v69_v26, 1  ;;  %v84_v30 = vrot.slane %v83_v27, 1  ;;  %150 = vst [vmem:[#allocation1 + $0x30] sm:$0xff] %v149_v24 }
   0xb   :  { %v98_v31 = vrot.slane %v97_v28, 1  ;;  %v111_v32 = vld [vmem:[#allocation0 + $0x3f] ss:$-1 sm:$0xff]  ;;  %164 = vst [vmem:[#allocation1 + $0x38] sm:$0xff] %v163_v25  ;;  %v125_v34 = vld [vmem:[#allocation0 + $0x4f] ss:$-1 sm:$0xff] }
   0xc   :  { %v112_v33 = vrot.slane %v111_v32, 1  ;;  %v139_v35 = vld [vmem:[#allocation0 + $0x5f] ss:$-1 sm:$0xff]  ;;  %74 = vst.msk [vmem:[#allocation1] sm:$0xff] %vm73_vm0, %v70_v29  ;;  %88 = vst.msk [vmem:[#allocation1 + $0x8] sm:$0xff] %vm73_vm0, %v84_v30  ;;  %v126_v36 = vrot.slane %v125_v34, 1 }
   0xd   :  { %102 = vst.msk [vmem:[#allocation1 + $0x10] sm:$0xff] %vm73_vm0, %v98_v31  ;;  %v140_v37 = vrot.slane %v139_v35, 1  ;;  %v153_v38 = vld [vmem:[#allocation0 + $0x6f] ss:$-1 sm:$0xff]  ;;  %v167_v39 = vld [vmem:[#allocation0 + $0x7f] ss:$-1 sm:$0xff] }
   0xe   :  { %116 = vst.msk [vmem:[#allocation1 + $0x18] sm:$0xff] %vm73_vm0, %v112_v33  ;;  %v154_v40 = vrot.slane %v153_v38, 1  ;;  %v168_v41 = vrot.slane %v167_v39, 1  ;;  %130 = vst.msk [vmem:[#allocation1 + $0x20] sm:$0xff] %vm73_vm0, %v126_v36 }
   0xf   :  { %144 = vst.msk [vmem:[#allocation1 + $0x28] sm:$0xff] %vm73_vm0, %v140_v37 }
  0x10   :  { %158 = vst.msk [vmem:[#allocation1 + $0x30] sm:$0xff] %vm73_vm0, %v154_v40  ;;  %172 = vst.msk [vmem:[#allocation1 + $0x38] sm:$0xff] %vm73_vm0, %v168_v41 }
  0x13   :  { %v214_v42 = vld [vmem:[#allocation1] sm:$0xff]  ;;  %v216_v43 = vld [vmem:[#allocation1 + $0x8] sm:$0xff] }
  0x14   :  { %v218_v44 = vld [vmem:[#allocation1 + $0x10] sm:$0xff]  ;;  %215 = vst [vmem:[%s330_s1] sm:$0xff] %v214_v42  ;;  %217 = vst [vmem:[%s330_s1 + $0x8] sm:$0xff] %v216_v43 }
  0x15   :  { %219 = vst [vmem:[%s330_s1 + $0x10] sm:$0xff] %v218_v44  ;;  %v220_v45 = vld [vmem:[#allocation1 + $0x18] sm:$0xff]  ;;  %v222_v46 = vld [vmem:[#allocation1 + $0x20] sm:$0xff] }
  0x16   :  { %221 = vst [vmem:[%s330_s1 + $0x18] sm:$0xff] %v220_v45  ;;  %v224_v47 = vld [vmem:[#allocation1 + $0x28] sm:$0xff]  ;;  %223 = vst [vmem:[%s330_s1 + $0x20] sm:$0xff] %v222_v46 }
  0x17   :  { %225 = vst [vmem:[%s330_s1 + $0x28] sm:$0xff] %v224_v47  ;;  %v226_v48 = vld [vmem:[#allocation1 + $0x30] sm:$0xff]  ;;  %v228_v49 = vld [vmem:[#allocation1 + $0x38] sm:$0xff] }
  0x18   :  { %227 = vst [vmem:[%s330_s1 + $0x30] sm:$0xff] %v226_v48  ;;  %229 = vst [vmem:[%s330_s1 + $0x38] sm:$0xff] %v228_v49 }

// kernel: spectral_conv2d.1
= control target key start
LH: loop header
LB: loop body
LE: loop exit
PB: predicated region body
PF: predicated region fallthrough
CT: control target
= control target key end

     0   :  { %s318_s0 = inlined_call_operand.vmem [shape: f32[2,2,4,128], index: 0, kind: input, shape index: {}]   ;;  %s319_s1 = inlined_call_operand.vmem [shape: f32[2,4,4,128], index: 1, kind: input, shape index: {}]   ;;  %s320_s2 = inlined_call_operand.vmem [shape: f32[2,2,4,128], index: 2, kind: output, shape index: {}]  }
   0x1   :  { %v183_v0 = vld [vmem:[%s318_s0] ss:$0 sm:$0xff]  ;;  %v185_v1 = vld [vmem:[%s318_s0 + $0x8] ss:$0 sm:$0xff]  ;;  %v182_v3 = vld [vmem:[%s319_s1 + $0x10] sm:$0xf] }
   0x2   :  { %v237_v2 = vld [vmem:[%s319_s1] sm:$0xf]  ;;  %v193_v6 = vld [vmem:[%s318_s0 + $0x9] ss:$0 sm:$0xff]  ;;  %v37_v8 = vmul.f32 %v185_v1, %v182_v3  ;;  %v189_v9 = vld [vmem:[%s319_s1 + $0x4] sm:$0xf]  ;;  %v43_v12 = vmul.f32 %v183_v0, %v182_v3 }
   0x3   :  { %v27_v4 = vmul.f32 %v183_v0, %v237_v2  ;;  %v191_v5 = vld [vmem:[%s318_s0 + $0x1] ss:$0 sm:$0xff]  ;;  %v45_v7 = vmul.f32 %v185_v1, %v237_v2  ;;  %v190_v10 = vld [vmem:[%s319_s1 + $0x14] sm:$0xf]  ;;  %v199_v11 = vld [vmem:[%s318_s0 + $0x2] ss:$0 sm:$0xff]  ;;  %v85_v19 = vmul.f32 %v193_v6, %v189_v9 }
   0x4   :  { %v67_v13 = vmul.f32 %v191_v5, %v189_v9  ;;  %v77_v14 = vmul.f32 %v193_v6, %v190_v10  ;;  %v201_v15 = vld [vmem:[%s318_s0 + $0xa] ss:$0 sm:$0xff]  ;;  %v198_v17 = vld [vmem:[%s319_s1 + $0x18] sm:$0xf]  ;;  %v83_v18 = vmul.f32 %v191_v5, %v190_v10  ;;  %v207_v23 = vld [vmem:[%s318_s0 + $0x3] ss:$0 sm:$0xff] }
   0x5   :  { %v197_v16 = vld [vmem:[%s319_s1 + $0x8] sm:$0xf]  ;;  %v39_v20 = vsub.f32 %v27_v4, %v37_v8  ;;  %v117_v22 = vmul.f32 %v201_v15, %v198_v17  ;;  %v205_v25 = vld [vmem:[%s319_s1 + $0xc] sm:$0xf]  ;;  %v47_v26 = vadd.f32 %v45_v7, %v43_v12  ;;  %v206_v28 = vld [vmem:[%s319_s1 + $0x1c] sm:$0xf]  ;;  %v123_v33 = vmul.f32 %v199_v11, %v198_v17 }
   0x6   :  { %v107_v21 = vmul.f32 %v199_v11, %v197_v16  ;;  %v209_v24 = vld [vmem:[%s318_s0 + $0xb] ss:$0 sm:$0xff]  ;;  %v79_v27 = vsub.f32 %v67_v13, %v77_v14  ;;  %v147_v29 = vmul.f32 %v207_v23, %v205_v25  ;;  %v184_v30 = vld [vmem:[%s318_s0 + $0x4] ss:$0 sm:$0xff]  ;;  %v186_v31 = vld [vmem:[%s318_s0 + $0xc] ss:$0 sm:$0xff]  ;;  %v87_v32 = vadd.f32 %v85_v19, %v83_v18 }
   0x7   :  { %v157_v35 = vmul.f32 %v209_v24, %v206_v28  ;;  %v28_v36 = vmul.f32 %v184_v30, %v237_v2  ;;  %v38_v37 = vmul.f32 %v186_v31, %v182_v3  ;;  %v192_v38 = vld [vmem:[%s318_s0 + $0x5] ss:$0 sm:$0xff]  ;;  %v194_v39 = vld [vmem:[%s318_s0 + $0xd] ss:$0 sm:$0xff]  ;;  %v200_v40 = vld [vmem:[%s318_s0 + $0x6] ss:$0 sm:$0xff]  ;;  %v125_v57 = vmul.f32 %v201_v15, %v197_v16 }
   0x8   :  { %v119_v34 = vsub.f32 %v107_v21, %v117_v22  ;;  %v81_v41 = vadd.f32 %v79_v27, %v39_v20  ;;  %v68_v42 = vmul.f32 %v192_v38, %v189_v9  ;;  %v78_v43 = vmul.f32 %v194_v39, %v190_v10  ;;  %v202_v44 = vld [vmem:[%s318_s0 + $0xe] ss:$0 sm:$0xff]  ;;  %v208_v46 = vld [vmem:[%s318_s0 + $0x7] ss:$0 sm:$0xff]  ;;  %v210_v47 = vld [vmem:[%s318_s0 + $0xf] ss:$0 sm:$0xff] }
   0x9   :  { %v108_v45 = vmul.f32 %v200_v40, %v197_v16  ;;  %v159_v48 = vsub.f32 %v147_v29, %v157_v35  ;;  %v40_v49 = vsub.f32 %v28_v36, %v38_v37  ;;  %v118_v50 = vmul.f32 %v202_v44, %v198_v17 }
   0xa   :  { %v148_v51 = vmul.f32 %v208_v46, %v205_v25  ;;  %v121_v52 = vadd.f32 %v119_v34, %v81_v41  ;;  %v80_v53 = vsub.f32 %v68_v42, %v78_v43  ;;  %v158_v54 = vmul.f32 %v210_v47, %v206_v28 }
   0xb   :  { %v89_v55 = vadd.f32 %v87_v32, %v47_v26  ;;  %v120_v56 = vsub.f32 %v108_v45, %v118_v50  ;;  %v163_v58 = vmul.f32 %v207_v23, %v206_v28  ;;  %v165_v59 = vmul.f32 %v209_v24, %v205_v25 }
   0xc   :  { %v161_v60 = vadd.f32 %v159_v48, %v121_v52  ;;  %v82_v61 = vadd.f32 %v80_v53, %v40_v49  ;;  %v160_v62 = vsub.f32 %v148_v51, %v158_v54  ;;  %v44_v63 = vmul.f32 %v184_v30, %v182_v3 }
   0xd   :  { %v127_v0 = vadd.f32 %v125_v57, %v123_v33  ;;  %v167_v1 = vadd.f32 %v165_v59, %v163_v58  ;;  %v46_v4 = vmul.f32 %v186_v31, %v237_v2  ;;  %v84_v5 = vmul.f32 %v192_v38, %v190_v10 }
   0xe   :  { %171 = vst [vmem:[%s320_s2] sm:$0xf] %v161_v60  ;;  %v122_v6 = vadd.f32 %v120_v56, %v82_v61  ;;  %v86_v7 = vmul.f32 %v194_v39, %v189_v9  ;;  %v124_v8 = vmul.f32 %v200_v40, %v198_v17  ;;  %v126_v11 = vmul.f32 %v202_v44, %v197_v16 }
   0xf   :  { %v129_v12 = vadd.f32 %v127_v0, %v89_v55  ;;  %v48_v13 = vadd.f32 %v46_v4, %v44_v63  ;;  %v164_v14 = vmul.f32 %v208_v46, %v206_v28  ;;  %v166_v15 = vmul.f32 %v210_v47, %v205_v25 }
  0x10   :  { %v162_v18 = vadd.f32 %v160_v62, %v122_v6  ;;  %v88_v19 = vadd.f32 %v86_v7, %v84_v5  ;;  %v128_v3 = vadd.f32 %v126_v11, %v124_v8 }
  0x11   :  { %v169_v20 = vadd.f32 %v167_v1, %v129_v12  ;;  %v168_v10 = vadd.f32 %v166_v15, %v164_v14 }
  0x12   :  { %172 = vst [vmem:[%s320_s2 + $0x4] sm:$0xf] %v162_v18  ;;  %v90_v2 = vadd.f32 %v88_v19, %v48_v13 }
  0x13   :  { %211 = vst [vmem:[%s320_s2 + $0x8] sm:$0xf] %v169_v20 }
  0x14   :  { %v130_v9 = vadd.f32 %v128_v3, %v90_v2 }
  0x16   :  { %v170_v16 = vadd.f32 %v168_v10, %v130_v9 }
  0x18   :  { %212 = vst [vmem:[%s320_s2 + $0xc] sm:$0xf] %v170_v16 }

</bundles_post_ra>
